<compile_context>
chip_gen: v6e
topology: v6e:2x2x1
jax: 0.10.0
libtpu: 0.0.40
codegen_flags: <defaults>
</compile_context>

<pallas_src>
import jax
import jax.numpy as jnp
from jax import lax
from jax.experimental import pallas as pl
from jax.experimental.pallas import tpu as pltpu


def _make_tv_kernel(w, hw, tn, n_images, needs_mask):
    """Builds a kernel over a (tn, hw) block of flattened images."""

    def kernel(x_ref, out_ref):
        x = x_ref[...].astype(jnp.float32)                     # (tn, hw)

        # gx: x[m, n] - x[m, (n+1) % W] in flattened row-major per-image rows.
        nxt = jnp.roll(x, -1, axis=1)                          # x_flat[j + 1]
        wrap = jnp.roll(x, w - 1, axis=1)                      # x_flat[j - (W-1)]
        col = lax.broadcasted_iota(jnp.int32, (1, hw), 1)
        is_last_col = (col % w) == (w - 1)
        gx = x - jnp.where(is_last_col, wrap, nxt)

        # gy: x[m, n] - x[(m+1) % H, n] == roll of the flattened row by -W.
        gy = x - jnp.roll(x, -w, axis=1)

        tv = jnp.sqrt(gx * gx + gy * gy)

        # Per-image partial sums (cross-lane reduce once per block).
        row_sums = jnp.sum(tv, axis=1, keepdims=True)          # (tn, 1)

        if needs_mask:
            # Ragged last block: zero out rows beyond the real image count.
            base = pl.program_id(0) * tn
            rows = lax.broadcasted_iota(jnp.int32, (tn, 1), 0)
            row_sums = jnp.where(base + rows < n_images, row_sums, 0.0)

        out_ref[...] = row_sums

    return kernel


def tv_loss(output):
    """Pallas TV loss.  `output` has shape (B, C1, C2, H, W) (any >=2-D works)."""
    shape = output.shape
    h, w = shape[-2], shape[-1]
    n = 1
    for s in shape[:-2]:
        n *= int(s)
    hw = int(h) * int(w)

    # Zero-copy: flatten leading dims to N and the image to H*W (lane axis).
    x = output.reshape(n, hw)

    itemsize = jnp.dtype(output.dtype).itemsize
    sub = max(1, 32 // itemsize)            # sublane packing: 8 f32 / 16 bf16 / 32 i8
    target_elems = 512 * 1024               # ~2 MiB of f32 per input block
    tn = (target_elems // max(1, hw)) // sub * sub
    tn = max(sub, tn)
    if tn >= n:
        tn = n                              # single full block (always layout-legal)
    grid = pl.cdiv(n, tn)
    needs_mask = (grid * tn != n)

    kernel = _make_tv_kernel(int(w), hw, tn, n, needs_mask)

    partial = pl.pallas_call(
        kernel,
        out_shape=jax.ShapeDtypeStruct((grid * tn, 1), jnp.float32),
        grid_spec=pltpu.PrefetchScalarGridSpec(
            num_scalar_prefetch=0,
            grid=(grid,),
            in_specs=[pl.BlockSpec((tn, hw), lambda i: (i, 0))],
            out_specs=pl.BlockSpec((tn, 1), lambda i: (i, 0)),
        ),
        compiler_params=pltpu.CompilerParams(
            dimension_semantics=("parallel",),       # per-block partials -> no races
            vmem_limit_bytes=32 * 1024 * 1024,
        ),
    )(x)

    denom = 1.0
    for s in shape:
        denom *= float(s)
    return jnp.sum(partial) / denom


def tv_loss_ref(output):
    """Pure-JAX reference (same circular-difference math as the FFT conv)."""
    x = output.astype(jnp.float32)
    gx = x - jnp.roll(x, -1, axis=-1)
    gy = x - jnp.roll(x, -1, axis=-2)
    tv = jnp.sqrt(gx * gx + gy * gy)
    denom = 1.0
    for s in output.shape:
        denom *= float(s)
    return jnp.sum(tv) / denom


if __name__ == "__main__":
    key = jax.random.PRNGKey(0)
    # 5-D input, as implied by output.shape[0..4] in the PyTorch forward.
    shape = (2, 2, 3, 16, 16)  # (B, C1, C2, H, W)
    x = jax.random.normal(key, shape, dtype=jnp.float32)

    out = jax.block_until_ready(tv_loss(x))
    ref = tv_loss_ref(x)
    assert jnp.allclose(out, ref, rtol=1e-5, atol=1e-5), (out, ref)

    print("KERNEL_OK")
</pallas_src>

<mosaic_0001>
module attributes {stable_mosaic.version = 11 : i64} {
  func.func @kernel(%arg0: i32, %arg1: memref<12x256xf32, #tpu.memory_space<vmem>>, %arg2: memref<12x1xf32, #tpu.memory_space<vmem>>) attributes {dimension_semantics = [#tpu.dimension_semantics<parallel>], iteration_bounds = array<i64: 1>, scalar_prefetch = 0 : i64, scratch_operands = 0 : i64, tpu.core_type = #tpu.core_type<tc>, window_params = [{transform_indices = @transform_0, window_bounds = array<i64: 12, 256>}, {transform_indices = @transform_1, window_bounds = array<i64: 12, 1>}]} {
    %c0 = arith.constant 0 : index
    %c0_0 = arith.constant 0 : index
    %0 = vector.load %arg1[%c0, %c0_0] : memref<12x256xf32, #tpu.memory_space<vmem>>, vector<12x256xf32>
    %1 = vector.extract_strided_slice %0 {offsets = [0, 1], sizes = [12, 255], strides = [1, 1]} : vector<12x256xf32> to vector<12x255xf32>
    %2 = vector.extract_strided_slice %0 {offsets = [0, 0], sizes = [12, 1], strides = [1, 1]} : vector<12x256xf32> to vector<12x1xf32>
    %3 = tpu.concatenate %1, %2 in 1 : vector<12x255xf32>, vector<12x1xf32> -> vector<12x256xf32>
    %4 = vector.extract_strided_slice %0 {offsets = [0, 241], sizes = [12, 15], strides = [1, 1]} : vector<12x256xf32> to vector<12x15xf32>
    %5 = vector.extract_strided_slice %0 {offsets = [0, 0], sizes = [12, 241], strides = [1, 1]} : vector<12x256xf32> to vector<12x241xf32>
    %6 = tpu.concatenate %4, %5 in 1 : vector<12x15xf32>, vector<12x241xf32> -> vector<12x256xf32>
    %7 = tpu.iota {dimensions = array<i32: 1>} : vector<1x256xi32>
    %c16_i32 = arith.constant 16 : i32
    %c0_i32 = arith.constant 0 : i32
    %8 = arith.cmpi eq, %c16_i32, %c0_i32 : i32
    %c1_i32 = arith.constant 1 : i32
    %9 = arith.select %8, %c1_i32, %c16_i32 : i32
    %10 = vector.broadcast %9 : i32 to vector<1x256xi32>
    %11 = arith.remsi %7, %10 : vector<1x256xi32>
    %c0_i32_1 = arith.constant 0 : i32
    %12 = vector.broadcast %c0_i32_1 : i32 to vector<1x256xi32>
    %13 = arith.cmpi ne, %11, %12 : vector<1x256xi32>
    %c0_i32_2 = arith.constant 0 : i32
    %14 = vector.broadcast %c0_i32_2 : i32 to vector<1x256xi32>
    %15 = arith.cmpi slt, %11, %14 : vector<1x256xi32>
    %c0_i32_3 = arith.constant 0 : i32
    %16 = arith.cmpi slt, %9, %c0_i32_3 : i32
    %17 = vector.broadcast %16 : i1 to vector<1x256xi1>
    %18 = vector.broadcast %17 : vector<1x256xi1> to vector<1x256xi1>
    %19 = arith.xori %15, %18 : vector<1x256xi1>
    %20 = arith.andi %19, %13 : vector<1x256xi1>
    %21 = vector.broadcast %9 : i32 to vector<1x256xi32>
    %22 = arith.addi %11, %21 : vector<1x256xi32>
    %23 = arith.select %20, %22, %11 : vector<1x256xi1>, vector<1x256xi32>
    %c15_i32 = arith.constant 15 : i32
    %24 = vector.broadcast %c15_i32 : i32 to vector<1x256xi32>
    %25 = arith.cmpi eq, %23, %24 : vector<1x256xi32>
    %26 = vector.shape_cast %25 : vector<1x256xi1> to vector<1x256xi1>
    %27 = vector.broadcast %26 : vector<1x256xi1> to vector<12x256xi1>
    %28 = arith.select %27, %6, %3 : vector<12x256xi1>, vector<12x256xf32>
    %29 = arith.subf %0, %28 : vector<12x256xf32>
    %30 = vector.extract_strided_slice %0 {offsets = [0, 16], sizes = [12, 240], strides = [1, 1]} : vector<12x256xf32> to vector<12x240xf32>
    %31 = vector.extract_strided_slice %0 {offsets = [0, 0], sizes = [12, 16], strides = [1, 1]} : vector<12x256xf32> to vector<12x16xf32>
    %32 = tpu.concatenate %30, %31 in 1 : vector<12x240xf32>, vector<12x16xf32> -> vector<12x256xf32>
    %33 = arith.subf %0, %32 : vector<12x256xf32>
    %34 = arith.mulf %29, %29 : vector<12x256xf32>
    %35 = arith.mulf %33, %33 : vector<12x256xf32>
    %36 = arith.addf %34, %35 : vector<12x256xf32>
    %37 = math.sqrt %36 : vector<12x256xf32>
    %cst = arith.constant dense<0.000000e+00> : vector<12xf32>
    %38 = vector.multi_reduction <add>, %37, %cst [1] : vector<12x256xf32> to vector<12xf32>
    %39 = vector.shape_cast %38 : vector<12xf32> to vector<12x1xf32>
    %c0_4 = arith.constant 0 : index
    %c0_5 = arith.constant 0 : index
    %40 = vector.load %arg2[%c0_4, %c0_5] : memref<12x1xf32, #tpu.memory_space<vmem>>, vector<12x1xf32>
    tpu.vector_store %arg2[%c0_4, %c0_5], %39 {strides = array<i32>} : memref<12x1xf32, #tpu.memory_space<vmem>>, vector<12x1xf32>,
    return
  }
  func.func @transform_0(%arg0: i32) -> (i32, i32) {
    %c0_i32 = arith.constant 0 : i32
    %c0_i32_0 = arith.constant 0 : i32
    return %arg0, %c0_i32 : i32, i32
  }
  func.func @transform_1(%arg0: i32) -> (i32, i32) {
    %c0_i32 = arith.constant 0 : i32
    %c0_i32_0 = arith.constant 0 : i32
    return %arg0, %c0_i32 : i32, i32
  }
}

</mosaic_0001>

<bundles_post_ra>
// kernel: tpu_custom_call.1
= control target key start
LH: loop header
LB: loop body
LE: loop exit
PB: predicated region body
PF: predicated region fallthrough
CT: control target
= control target key end

     0   :  { %6 = vsyncpa [#allocation3], 0  ;;  %s226_s6 = smov [#allocation2]   ;;  %s279_s0 = inlined_call_operand.hbm [shape: f32[12,256], index: 0, kind: input, shape index: {}]   ;;  %s280_s1 = inlined_call_operand.vmem [shape: f32[12,1], index: 1, kind: output, shape index: {}]  }
   0x1   :  { %s12_s7 = sshll.u32 %s226_s6, 4  ;;  %s13_s7 = int_to_ptr.vmem [resolvable:$true] %s12_s7 }
   0x2   :  { %s212_s8 = scalar_lea.vmem %s13_s7, 512  ;;  %p217_p1 = scmp.lt.s32.totalorder %s13_s7, %s13_s7 }
   0x3   :  { %p213_p0 = scmp.ne.s32.totalorder %s13_s7, %s212_s8  ;;  %p218_p2 = scmp.lt.s32.totalorder %s212_s8, %s212_s8 }
   0x5   :  { %p219_p3 = por %p218_p2, %p217_p1 }
   0x7   :  { %p220_p4 = pnand %p219_p3, %p213_p0 }
   0x9   :  { %223 = shalt.err (!%p220_p4)
}
   0xa   :  { %s227_s9 = smov 256   ;;  %s228_s10 = smov 16  }
   0xb   :  { %18 = dma.hbm_to_vmem [thread:$0]  %s279_s0, 512, %s13_s7, [#allocation3], %s227_s9, %s227_s9, %s228_s10  }
   0xc   :  { %224 = dma.done.wait [#allocation3], 512  }
   0xd   :  { %225 = vsyncadd [#allocation3], 4294966784  ;;  %v25_v0 = vld [vmem:[#allocation2 + $0x18] sm:$0xf]  ;;  %v24_v1 = vld [vmem:[#allocation2 + $0x10] sm:$0xf]  ;;  %v68_v4 = vlaneseq }
   0xe   :  { %s229_s13 = smov 15   ;;  %s230_s14 = smov 127   ;;  %v23_v2 = vld [vmem:[#allocation2 + $0x8] sm:$0xff]  ;;  %v22_v3 = vld [vmem:[#allocation2] sm:$0xff]  ;;  %vm59_vm0 = vcmask 121856   ;;  %vm38_vm1 = vcmask 1039360  }
   0xf   :  { %51 = vrot.lane.b32.xlu1 %v25_v0, %s229_s13  ;;  %34 = vrot.lane.b32.xlu0 %v24_v1, %s230_s14  ;;  %s231_s15 = smov 112   ;;  %v69_v5 = vand.u32 127, %v68_v4  ;;  %vm117_vm4 = vcmask 916480   ;;  %vm175_vm6 = vcmask 1043456   ;;  %vm183_vm14 = vcmask 3072  }
  0x10   :  { %vm181_vm15 = vcmask 7168  }
  0x11   :  { %v70_v8 = vadd.s32 128, %v69_v5  ;;  %v75_v11 = vand.u32 15, %v69_v5 }
  0x13   :  { %57 = vrot.lane.b32.xlu1 %v24_v1, %s229_s13  ;;  %36 = vrot.lane.b32.xlu0 %v25_v0, %s230_s14  ;;  %v82_v12 = vand.u32 15, %v70_v8  ;;  %vm246_vm2 = vcmp.eq.s32.totalorder %v75_v11, 15 }
  0x15   :  { %vm252_vm3 = vcmp.eq.s32.totalorder %v82_v12, 15 }
  0x17   :  { %32 = vrot.lane.b32.xlu1 %v23_v2, %s230_s14  ;;  %30 = vrot.lane.b32.xlu0 %v22_v3, %s230_s14 }
  0x1b   :  { %55 = vrot.lane.b32.xlu1 %v22_v3, %s229_s13  ;;  %49 = vrot.lane.b32.xlu0 %v23_v2, %s229_s13 }
  0x1f   :  { %115 = vrot.lane.b32.xlu1 %v25_v0, %s231_s15  ;;  %113 = vrot.lane.b32.xlu0 %v24_v1, %s231_s15 }
  0x23   :  { %111 = vrot.lane.b32.xlu1 %v23_v2, %s231_s15  ;;  %109 = vrot.lane.b32.xlu0 %v22_v3, %s231_s15 }
  0x81   :  { %v52_v6 = vpop.permute.xlu1 %51  ;;  %v35_v7 = vpop.permute.xlu0 %34 }
  0x85   :  { %v58_v9 = vpop.permute.xlu1 %57  ;;  %v37_v10 = vpop.permute.xlu0 %36 }
  0x86   :  { %v67_v15 = vsel %vm59_vm0, %v52_v6, %v58_v9  ;;  %v40_v17 = vsel %vm38_vm1, %v35_v7, %v37_v10  ;;  %v61_v18 = vsel %vm59_vm0, %v58_v9, %v52_v6  ;;  %v48_v20 = vsel %vm38_vm1, %v37_v10, %v35_v7 }
  0x87   :  { %v103_v21 = vsel %vm246_vm2, %v67_v15, %v40_v17  ;;  %v104_v24 = vsel %vm252_vm3, %v61_v18, %v48_v20 }
  0x88   :  { %v107_v27 = vsub.f32 %v24_v1, %v103_v21  ;;  %v108_v29 = vsub.f32 %v25_v0, %v104_v24 }
  0x89   :  { %v33_v13 = vpop.permute.xlu1 %32  ;;  %v31_v14 = vpop.permute.xlu0 %30 }
  0x8a   :  { %v39_v28 = vsel %vm38_vm1, %v31_v14, %v33_v13  ;;  %v47_v30 = vsel %vm38_vm1, %v33_v13, %v31_v14  ;;  %v134_v39 = vmul.f32 %v107_v27, %v107_v27  ;;  %v135_v41 = vmul.f32 %v108_v29, %v108_v29 }
  0x8d   :  { %v56_v22 = vpop.permute.xlu1 %55  ;;  %v50_v23 = vpop.permute.xlu0 %49 }
  0x8e   :  { %v66_v25 = vsel %vm59_vm0, %v50_v23, %v56_v22  ;;  %v60_v26 = vsel %vm59_vm0, %v56_v22, %v50_v23 }
  0x8f   :  { %v101_v31 = vsel %vm246_vm2, %v66_v25, %v39_v28  ;;  %v102_v34 = vsel %vm252_vm3, %v60_v26, %v47_v30 }
  0x90   :  { %v105_v40 = vsub.f32 %v22_v3, %v101_v31  ;;  %v106_v42 = vsub.f32 %v23_v2, %v102_v34 }
  0x91   :  { %v116_v32 = vpop.permute.xlu1 %115  ;;  %v114_v33 = vpop.permute.xlu0 %113 }
  0x92   :  { %v119_v35 = vsel %vm117_vm4, %v114_v33, %v116_v32  ;;  %v127_v36 = vsel %vm117_vm4, %v116_v32, %v114_v33  ;;  %v132_v53 = vmul.f32 %v105_v40, %v105_v40  ;;  %v133_v54 = vmul.f32 %v106_v42, %v106_v42 }
  0x93   :  { %v130_v37 = vsub.f32 %v24_v1, %v119_v35  ;;  %v131_v38 = vsub.f32 %v25_v0, %v127_v36 }
  0x95   :  { %v138_v43 = vmul.f32 %v130_v37, %v130_v37  ;;  %v139_v44 = vmul.f32 %v131_v38, %v131_v38  ;;  %v112_v45 = vpop.permute.xlu1 %111  ;;  %v110_v46 = vpop.permute.xlu0 %109 }
  0x96   :  { %v118_v47 = vsel %vm117_vm4, %v110_v46, %v112_v45  ;;  %v126_v48 = vsel %vm117_vm4, %v112_v45, %v110_v46 }
  0x97   :  { %v142_v49 = vadd.f32 %v138_v43, %v134_v39  ;;  %v143_v50 = vadd.f32 %v139_v44, %v135_v41  ;;  %v128_v51 = vsub.f32 %v22_v3, %v118_v47  ;;  %v129_v52 = vsub.f32 %v23_v2, %v126_v48 }
  0x99   :  { %196 = vrsqrt.f32 %v142_v49  ;;  %v136_v55 = vmul.f32 %v128_v51, %v128_v51  ;;  %v137_v56 = vmul.f32 %v129_v52, %v129_v52  ;;  %vm160_vm5 = vcmp.eq.f32.partialorder %v142_v49, inf }
  0x9a   :  { %198 = vrsqrt.f32 %v143_v50  ;;  %v163_v62 = vand.u32 2147483648, %v142_v49  ;;  %vm162_vm7 = vcmp.eq.f32.partialorder %v142_v49, 0.0  ;;  %vm167_vm8 = vcmp.eq.f32.partialorder %v143_v50, inf }
  0x9b   :  { %v140_v57 = vadd.f32 %v136_v55, %v132_v53  ;;  %v141_v58 = vadd.f32 %v137_v56, %v133_v54  ;;  %v170_v1 = vand.u32 2147483648, %v143_v50  ;;  %vm169_vm9 = vcmp.eq.f32.partialorder %v143_v50, 0.0 }
  0x9d   :  { %200 = vrsqrt.f32 %v140_v57  ;;  %vm146_vm10 = vcmp.eq.f32.partialorder %v140_v57, inf  ;;  %vm148_vm11 = vcmp.eq.f32.partialorder %v140_v57, 0.0  ;;  %v149_v10 = vand.u32 2147483648, %v140_v57 }
  0x9e   :  { %202 = vrsqrt.f32 %v141_v58  ;;  %vm153_vm12 = vcmp.eq.f32.partialorder %v141_v58, inf  ;;  %v156_v14 = vand.u32 2147483648, %v141_v58  ;;  %vm155_vm13 = vcmp.eq.f32.partialorder %v141_v58, 0.0 }
  0xa6   :  { %v197_v59 = vpop.eup %196 }
  0xa7   :  { %v199_v60 = vpop.eup %198  ;;  %v159_v61 = vmul.f32 %v197_v59, %v142_v49 }
  0xa8   :  { %v166_v63 = vmul.f32 %v199_v60, %v143_v50 }
  0xa9   :  { %v161_v0 = vsel %vm160_vm5, %v142_v49, %v159_v61 }
  0xaa   :  { %v201_v2 = vpop.eup %200  ;;  %v164_v3 = vsel %vm162_vm7, %v163_v62, %v161_v0  ;;  %v168_v4 = vsel %vm167_vm8, %v143_v50, %v166_v63 }
  0xab   :  { %v203_v5 = vpop.eup %202  ;;  %v171_v6 = vsel %vm169_vm9, %v170_v1, %v168_v4  ;;  %v176_v7 = vsel %vm175_vm6, %v164_v3, 0.0  ;;  %v145_v8 = vmul.f32 %v201_v2, %v140_v57 }
  0xac   :  { %v177_v9 = vsel %vm175_vm6, %v171_v6, 0.0  ;;  %v152_v11 = vmul.f32 %v203_v5, %v141_v58 }
  0xad   :  { %v178_v12 = vadd.f32 %v177_v9, %v176_v7  ;;  %v147_v13 = vsel %vm146_vm10, %v140_v57, %v145_v8 }
  0xae   :  { %v150_v15 = vsel %vm148_vm11, %v149_v10, %v147_v13  ;;  %v154_v16 = vsel %vm153_vm12, %v141_v58, %v152_v11 }
  0xaf   :  { %179 = vadd.xlane.f32.xlu1 %v178_v12  ;;  %v157_v17 = vsel %vm155_vm13, %v156_v14, %v154_v16 }
  0xb0   :  { %v172_v18 = vadd.f32 %v157_v17, %v150_v15 }
  0xb2   :  { %173 = vadd.xlane.f32.xlu0 %v172_v18 }
 0x138   :  { %v180_v19 = vpop.xlane.xlu1 %179 }
 0x139   :  { %184 = vst.msk [vmem:[%s280_s1 + $0x8] sm:$0xf] %vm183_vm14, %v180_v19 }
 0x13b   :  { %v174_v20 = vpop.xlane.xlu0 %173 }
 0x13c   :  { %182 = vst.msk [vmem:[%s280_s1] sm:$0xff] %vm181_vm15, %v174_v20 }
 0x13d   :  { %189 = vsyncpa [#allocation3], 1 }

</bundles_post_ra>
